<compile_context>
chip_gen: v5e
topology: v5e:2x2
jax: 0.10.0
libtpu: 0.0.40
codegen_flags: <defaults>
</compile_context>

<pallas_src>
import functools
import math

import jax
import jax.numpy as jnp
from jax.experimental import pallas as pl
from jax.experimental.pallas import tpu as pltpu


# --------------------------------- helpers -------------------------------------
def _sigmoid(x):
    # One EUP op (tanh) instead of exp + reciprocal.
    return 0.5 * (jnp.tanh(0.5 * x) + 1.0)


def _choose_time_chunk(seq_len, batch, time_chunk):
    """Pick a chunk size whose (tc * B) row count is sublane-tile friendly."""
    tc = max(1, min(time_chunk, seq_len))
    if tc >= seq_len:
        return seq_len                        # single full-extent block
    granule = 16                              # covers bf16 (16) and fp32 (8) tiles
    step = granule // math.gcd(batch, granule)
    tc = ((tc + step - 1) // step) * step
    return seq_len if tc >= seq_len else tc


def _weight_spec(shape):
    # Loop-invariant operand: constant index map + single buffering so the
    # pipeline does not keep two copies of the weights in VMEM.
    return pl.BlockSpec(shape, lambda c: (0,) * len(shape),
                        pipeline_mode=pl.Buffered(buffer_count=1))


def _vmem_limit_bytes(tc, B, D, H, out_bytes, x_bytes, O=0):
    need = (2 * tc * B * D * x_bytes             # x chunk (double-buffered)
            + 2 * tc * B * H * out_bytes         # hidden-seq out chunk
            + (D + H) * 4 * H * 2                # W_ih + W_hh (bf16, single-buf)
            + 4 * H * 4                          # fused bias
            + H * max(O, 1) * 4 + max(O, 1) * 4  # fc weights / bias
            + tc * B * 4 * H * 4                 # gx scratch (fp32)
            + 2 * B * H * 4                      # h / c state
            + 8 * B * 4 * H * 4)                 # gate temporaries headroom
    # Clamp: >= 32 MiB (v5e scoped default is 16 MiB), <= 64 MiB (v7x physical).
    return int(min(max(2 * need, 32 << 20), 64 << 20))


# ------------------------------ chunk recurrence --------------------------------
def _lstm_chunk(seq_len, tc, x_ref, wih_ref, b_ref, whh_ref,
                h_scr, c_scr, gx_scr, out_ref):
    """Runs `tc` LSTM steps on the current time chunk.

    x_ref  : (tc*B, D)   flattened time-major input rows for this chunk
    wih_ref: (D, 4H) bf16, whh_ref: (H, 4H) bf16   (gate order [i, f, g, o])
    b_ref  : (1, 4H) fp32 fused bias (b_ih + b_hh)
    h_scr / c_scr: (B, H) fp32 state carried across grid steps
    gx_scr : (tc*B, 4H) fp32 scratch holding the chunk's input projection
    out_ref: (tc*B, H) hidden-sequence output block, or None (last layer)
    Returns h after the chunk's last (possibly masked) step.
    """
    ci = pl.program_id(0)
    B, H = h_scr.shape

    @pl.when(ci == 0)
    def _():
        h_scr[...] = jnp.zeros_like(h_scr)
        c_scr[...] = jnp.zeros_like(c_scr)

    # Whole-chunk input projection: ONE big MXU matmul; bias added in fp32.
    gx_scr[...] = (
        jnp.dot(x_ref[...].astype(jnp.bfloat16), wih_ref[...],
                preferred_element_type=jnp.float32)
        + b_ref[...])

    h = h_scr[...]
    c = c_scr[...]
    rem = seq_len % tc
    for tau in range(tc):                          # fully unrolled, static indices
        # Single fused (B, H) x (H, 4H) recurrent matmul per step.
        gates = gx_scr[tau * B:(tau + 1) * B, :] + jnp.dot(
            h.astype(whh_ref.dtype), whh_ref[...],
            preferred_element_type=jnp.float32)
        i = _sigmoid(gates[:, 0 * H:1 * H])
        f = _sigmoid(gates[:, 1 * H:2 * H])
        g = jnp.tanh(gates[:, 2 * H:3 * H])
        o = _sigmoid(gates[:, 3 * H:4 * H])
        c_new = f * c + i * g
        h_new = o * jnp.tanh(c_new)
        if rem == 0 or tau < rem:                  # statically known in-range
            h, c = h_new, c_new
        else:                                      # only the final partial chunk
            valid = (ci * tc + tau) < seq_len
            h = jnp.where(valid, h_new, h)
            c = jnp.where(valid, c_new, c)
        if out_ref is not None:
            out_ref[tau * B:(tau + 1) * B, :] = h.astype(out_ref.dtype)
    h_scr[...] = h
    c_scr[...] = c
    return h


def _lstm_seq_kernel(seq_len, tc, x_ref, wih_ref, b_ref, whh_ref, out_ref,
                     h_scr, c_scr, gx_scr):
    """Intermediate layer: emits the full hidden sequence."""
    _lstm_chunk(seq_len, tc, x_ref, wih_ref, b_ref, whh_ref,
                h_scr, c_scr, gx_scr, out_ref)


def _lstm_last_kernel(seq_len, tc, x_ref, wih_ref, b_ref, whh_ref,
                      fcw_ref, fcb_ref, out_ref, h_scr, c_scr, gx_scr):
    """Last layer: keeps only the recurrence and fuses the final Linear."""
    h = _lstm_chunk(seq_len, tc, x_ref, wih_ref, b_ref, whh_ref,
                    h_scr, c_scr, gx_scr, None)

    @pl.when(pl.program_id(0) == pl.num_programs(0) - 1)
    def _():
        # Fused fc(h_{S-1}); fc weights are tiny, kept fp32.
        out_ref[...] = (jnp.dot(h, fcw_ref[...],
                                preferred_element_type=jnp.float32)
                        + fcb_ref[...])


# ---------------------------------- wrappers -------------------------------------
def _lstm_layer_seq(x_flat, w_ih, b, w_hh, *, seq_len, batch, time_chunk,
                    out_dtype=jnp.bfloat16):
    D = x_flat.shape[1]
    H = w_hh.shape[0]
    tc = _choose_time_chunk(seq_len, batch, time_chunk)
    n_chunks = pl.cdiv(seq_len, tc)
    rows = tc * batch
    limit = _vmem_limit_bytes(tc, batch, D, H,
                              out_bytes=jnp.dtype(out_dtype).itemsize,
                              x_bytes=x_flat.dtype.itemsize)
    return pl.pallas_call(
        functools.partial(_lstm_seq_kernel, seq_len, tc),
        out_shape=jax.ShapeDtypeStruct((seq_len * batch, H), out_dtype),
        grid_spec=pltpu.PrefetchScalarGridSpec(
            num_scalar_prefetch=0,
            grid=(n_chunks,),
            in_specs=[
                pl.BlockSpec((rows, D), lambda c: (c, 0)),      # x chunk
                _weight_spec((D, 4 * H)),                       # W_ih^T
                _weight_spec((1, 4 * H)),                       # fused bias
                _weight_spec((H, 4 * H)),                       # W_hh^T
            ],
            out_specs=pl.BlockSpec((rows, H), lambda c: (c, 0)),
            scratch_shapes=[pltpu.VMEM((batch, H), jnp.float32),     # h carry
                            pltpu.VMEM((batch, H), jnp.float32),     # c carry
                            pltpu.VMEM((rows, 4 * H), jnp.float32)], # gx chunk
        ),
        compiler_params=pltpu.CompilerParams(
            dimension_semantics=("arbitrary",),        # sequential recurrence
            vmem_limit_bytes=limit),
    )(x_flat, w_ih, b, w_hh)


def _lstm_layer_last(x_flat, w_ih, b, w_hh, fc_w_t, fc_b, *, seq_len, batch,
                     time_chunk):
    D = x_flat.shape[1]
    H = w_hh.shape[0]
    O = fc_w_t.shape[1]
    tc = _choose_time_chunk(seq_len, batch, time_chunk)
    n_chunks = pl.cdiv(seq_len, tc)
    rows = tc * batch
    limit = _vmem_limit_bytes(tc, batch, D, H, out_bytes=4,
                              x_bytes=x_flat.dtype.itemsize, O=O)
    return pl.pallas_call(
        functools.partial(_lstm_last_kernel, seq_len, tc),
        out_shape=jax.ShapeDtypeStruct((batch, O), jnp.float32),
        grid_spec=pltpu.PrefetchScalarGridSpec(
            num_scalar_prefetch=0,
            grid=(n_chunks,),
            in_specs=[
                pl.BlockSpec((rows, D), lambda c: (c, 0)),      # x chunk
                _weight_spec((D, 4 * H)),                       # W_ih^T
                _weight_spec((1, 4 * H)),                       # fused bias
                _weight_spec((H, 4 * H)),                       # W_hh^T
                _weight_spec((H, O)),                           # fc W^T
                _weight_spec((1, O)),                           # fc bias
            ],
            out_specs=pl.BlockSpec((batch, O), lambda c: (0, 0)),   # resident
            scratch_shapes=[pltpu.VMEM((batch, H), jnp.float32),
                            pltpu.VMEM((batch, H), jnp.float32),
                            pltpu.VMEM((rows, 4 * H), jnp.float32)],
        ),
        compiler_params=pltpu.CompilerParams(
            dimension_semantics=("arbitrary",),
            vmem_limit_bytes=limit),
    )(x_flat, w_ih, b, w_hh, fc_w_t, fc_b)


def lstm_forward(x, params, *, time_chunk=32):
    """x: (batch, seq, input_dim) fp32 -> (batch, output_dim) fp32."""
    B, S, _ = x.shape
    # Flattened time-major layout: row (t*B + b) holds x[b, t]; keeps the sublane
    # dim dense (tc*B rows per block) even for small batch sizes.
    x_flat = jnp.transpose(x, (1, 0, 2)).reshape(S * B, x.shape[2])
    layers = params["layers"]
    for (w_ih, w_hh, b) in layers[:-1]:
        x_flat = _lstm_layer_seq(x_flat, w_ih, b, w_hh, seq_len=S, batch=B,
                                 time_chunk=time_chunk)
    w_ih, w_hh, b = layers[-1]
    return _lstm_layer_last(x_flat, w_ih, b, w_hh, params["fc_w_t"],
                            params["fc_b"], seq_len=S, batch=B,
                            time_chunk=time_chunk)


# ---------------------------------- parameters -----------------------------------
def init_params(key, input_dim, hidden_dim, num_layers, output_dim):
    k = 1.0 / math.sqrt(hidden_dim)
    raw_layers = []
    layers = []
    for layer in range(num_layers):
        in_dim = input_dim if layer == 0 else hidden_dim
        key, k1, k2, k3, k4 = jax.random.split(key, 5)
        w_ih = jax.random.uniform(k1, (4 * hidden_dim, in_dim), jnp.float32, -k, k)
        w_hh = jax.random.uniform(k2, (4 * hidden_dim, hidden_dim), jnp.float32, -k, k)
        b_ih = jax.random.uniform(k3, (4 * hidden_dim,), jnp.float32, -k, k)
        b_hh = jax.random.uniform(k4, (4 * hidden_dim,), jnp.float32, -k, k)
        raw_layers.append((w_ih, w_hh, b_ih, b_hh))
        # Kernel layout: (D or H, 4H) so the per-step recurrence is one fused
        # matmul; PyTorch gate order [i, f, g, o] is preserved along the 4H axis.
        layers.append((
            w_ih.T.astype(jnp.bfloat16),                      # (D, 4H) bf16
            w_hh.T.astype(jnp.bfloat16),                      # (H, 4H) bf16
            (b_ih + b_hh).reshape(1, 4 * hidden_dim),         # (1, 4H) fp32
        ))
    key, k5, k6 = jax.random.split(key, 3)
    fc_w = jax.random.uniform(k5, (output_dim, hidden_dim), jnp.float32, -k, k)
    fc_b = jax.random.uniform(k6, (output_dim,), jnp.float32, -k, k)
    return {
        "layers": layers,
        "fc_w_t": fc_w.T,                        # (H, O) fp32
        "fc_b": fc_b.reshape(1, output_dim),     # (1, O) fp32
        "raw": {"layers": raw_layers, "fc_w": fc_w, "fc_b": fc_b},
    }


# ------------------------------ pure-JAX reference --------------------------------
def lstm_forward_ref(x, params):
    B = x.shape[0]
    x_tm = jnp.transpose(x, (1, 0, 2))
    for (w_ih, w_hh, b_ih, b_hh) in params["raw"]["layers"]:
        H = w_hh.shape[1]
        b = b_ih + b_hh

        def cell(carry, x_t, w_ih=w_ih, w_hh=w_hh, b=b):
            h, c = carry
            gates = x_t @ w_ih.T + h @ w_hh.T + b
            i, f, g, o = jnp.split(gates, 4, axis=-1)
            i = jax.nn.sigmoid(i)
            f = jax.nn.sigmoid(f)
            g = jnp.tanh(g)
            o = jax.nn.sigmoid(o)
            c = f * c + i * g
            h = o * jnp.tanh(c)
            return (h, c), h

        init = (jnp.zeros((B, H), jnp.float32), jnp.zeros((B, H), jnp.float32))
        _, ys = jax.lax.scan(cell, init, x_tm)
        x_tm = ys
    return x_tm[-1] @ params["raw"]["fc_w"].T + params["raw"]["fc_b"]


# ------------------------------------- demo ---------------------------------------
if __name__ == "__main__":
    def run_case(batch, seq, input_dim, hidden_dim, num_layers, output_dim,
                 time_chunk, seed):
        key = jax.random.PRNGKey(seed)
        key, xkey = jax.random.split(key)
        x = jax.random.normal(xkey, (batch, seq, input_dim), jnp.float32)
        params = init_params(key, input_dim, hidden_dim, num_layers, output_dim)
        out = jax.block_until_ready(lstm_forward(x, params, time_chunk=time_chunk))
        ref = jax.block_until_ready(lstm_forward_ref(x, params))
        assert out.shape == (batch, output_dim), out.shape
        # bf16 matmul operands in the kernel vs fp32 reference -> loosened tolerance.
        assert jnp.allclose(out, ref, atol=5e-2, rtol=5e-2), (out, ref)

    # Small shapes consistent with the PyTorch module.
    run_case(batch=2, seq=8, input_dim=16, hidden_dim=32, num_layers=2,
             output_dim=4, time_chunk=16, seed=0)
    # Exercises multi-chunk time grid + partial tail chunk masking (S % Tc != 0).
    run_case(batch=4, seq=20, input_dim=16, hidden_dim=32, num_layers=2,
             output_dim=4, time_chunk=8, seed=0)

    print("KERNEL_OK")
</pallas_src>

<mosaic_0001>
module attributes {stable_mosaic.version = 11 : i64} {
  func.func @_lstm_seq_kernel(%arg0: i32, %arg1: memref<16x16xf32, #tpu.memory_space<vmem>>, %arg2: memref<16x128xbf16, #tpu.memory_space<vmem>>, %arg3: memref<1x128xf32, #tpu.memory_space<vmem>>, %arg4: memref<32x128xbf16, #tpu.memory_space<vmem>>, %arg5: memref<16x32xbf16, #tpu.memory_space<vmem>>, %arg6: memref<2x32xf32, #tpu.memory_space<vmem>>, %arg7: memref<2x32xf32, #tpu.memory_space<vmem>>, %arg8: memref<16x128xf32, #tpu.memory_space<vmem>>) attributes {dimension_semantics = [#tpu.dimension_semantics<arbitrary>], iteration_bounds = array<i64: 1>, scalar_prefetch = 0 : i64, scratch_operands = 3 : i64, tpu.core_type = #tpu.core_type<tc>, window_params = [{transform_indices = @transform_0, window_bounds = array<i64: 16, 16>}, {pipeline_mode = #tpu.pipeline_mode<synchronous>, transform_indices = @transform_1, window_bounds = array<i64: 16, 128>}, {pipeline_mode = #tpu.pipeline_mode<synchronous>, transform_indices = @transform_2, window_bounds = array<i64: 1, 128>}, {pipeline_mode = #tpu.pipeline_mode<synchronous>, transform_indices = @transform_3, window_bounds = array<i64: 32, 128>}, {transform_indices = @transform_4, window_bounds = array<i64: 16, 32>}]} {
    %c0_i32 = arith.constant 0 : i32
    %0 = arith.cmpi eq, %arg0, %c0_i32 : i32
    %1 = arith.extui %0 : i1 to i32
    %c0_i32_0 = arith.constant 0 : i32
    %2 = arith.cmpi ne, %1, %c0_i32_0 : i32
    scf.if %2 {
      %cst_137 = arith.constant 0.000000e+00 : f32
      %319 = vector.broadcast %cst_137 : f32 to vector<2x32xf32>
      %c0_138 = arith.constant 0 : index
      %c0_139 = arith.constant 0 : index
      %320 = vector.load %arg6[%c0_138, %c0_139] : memref<2x32xf32, #tpu.memory_space<vmem>>, vector<2x32xf32>
      tpu.vector_store %arg6[%c0_138, %c0_139], %319 {strides = array<i32>} : memref<2x32xf32, #tpu.memory_space<vmem>>, vector<2x32xf32>,
      %cst_140 = arith.constant 0.000000e+00 : f32
      %321 = vector.broadcast %cst_140 : f32 to vector<2x32xf32>
      %c0_141 = arith.constant 0 : index
      %c0_142 = arith.constant 0 : index
      %322 = vector.load %arg7[%c0_141, %c0_142] : memref<2x32xf32, #tpu.memory_space<vmem>>, vector<2x32xf32>
      tpu.vector_store %arg7[%c0_141, %c0_142], %321 {strides = array<i32>} : memref<2x32xf32, #tpu.memory_space<vmem>>, vector<2x32xf32>,
    } else {
    }
    %c0 = arith.constant 0 : index
    %c0_1 = arith.constant 0 : index
    %3 = vector.load %arg1[%c0, %c0_1] : memref<16x16xf32, #tpu.memory_space<vmem>>, vector<16x16xf32>
    %4 = arith.truncf %3 : vector<16x16xf32> to vector<16x16xbf16>
    %c0_2 = arith.constant 0 : index
    %c0_3 = arith.constant 0 : index
    %5 = vector.load %arg2[%c0_2, %c0_3] : memref<16x128xbf16, #tpu.memory_space<vmem>>, vector<16x128xbf16>
    %cst = arith.constant dense<0.000000e+00> : vector<16x128xf32>
    %6 = tpu.matmul %4, %5, %cst {dimension_numbers = #tpu.dot_dimension_numbers<[1], [0], [0], [1], [0, 0, 1, 1], [], []>} : vector<16x16xbf16>, vector<16x128xbf16>, vector<16x128xf32> -> vector<16x128xf32>
    %c0_4 = arith.constant 0 : index
    %c0_5 = arith.constant 0 : index
    %7 = vector.load %arg3[%c0_4, %c0_5] : memref<1x128xf32, #tpu.memory_space<vmem>>, vector<1x128xf32>
    %8 = vector.broadcast %7 : vector<1x128xf32> to vector<16x128xf32>
    %9 = arith.addf %6, %8 : vector<16x128xf32>
    %c0_6 = arith.constant 0 : index
    %c0_7 = arith.constant 0 : index
    %10 = vector.load %arg8[%c0_6, %c0_7] : memref<16x128xf32, #tpu.memory_space<vmem>>, vector<16x128xf32>
    tpu.vector_store %arg8[%c0_6, %c0_7], %9 {strides = array<i32>} : memref<16x128xf32, #tpu.memory_space<vmem>>, vector<16x128xf32>,
    %c0_8 = arith.constant 0 : index
    %c0_9 = arith.constant 0 : index
    %11 = vector.load %arg6[%c0_8, %c0_9] : memref<2x32xf32, #tpu.memory_space<vmem>>, vector<2x32xf32>
    %c0_10 = arith.constant 0 : index
    %c0_11 = arith.constant 0 : index
    %12 = vector.load %arg7[%c0_10, %c0_11] : memref<2x32xf32, #tpu.memory_space<vmem>>, vector<2x32xf32>
    %c0_12 = arith.constant 0 : index
    %c0_13 = arith.constant 0 : index
    %13 = vector.load %arg8[%c0_12, %c0_13] : memref<16x128xf32, #tpu.memory_space<vmem>>, vector<2x128xf32>
    %14 = arith.truncf %11 : vector<2x32xf32> to vector<2x32xbf16>
    %c0_14 = arith.constant 0 : index
    %c0_15 = arith.constant 0 : index
    %15 = vector.load %arg4[%c0_14, %c0_15] : memref<32x128xbf16, #tpu.memory_space<vmem>>, vector<32x128xbf16>
    %cst_16 = arith.constant dense<0.000000e+00> : vector<2x128xf32>
    %16 = tpu.matmul %14, %15, %cst_16 {dimension_numbers = #tpu.dot_dimension_numbers<[1], [0], [0], [1], [0, 0, 1, 1], [], []>} : vector<2x32xbf16>, vector<32x128xbf16>, vector<2x128xf32> -> vector<2x128xf32>
    %17 = arith.addf %13, %16 : vector<2x128xf32>
    %18 = vector.extract_strided_slice %17 {offsets = [0, 0], sizes = [2, 32], strides = [1, 1]} : vector<2x128xf32> to vector<2x32xf32>
    %cst_17 = arith.constant 5.000000e-01 : f32
    %19 = vector.broadcast %cst_17 : f32 to vector<2x32xf32>
    %20 = arith.mulf %19, %18 : vector<2x32xf32>
    %21 = math.tanh %20 : vector<2x32xf32>
    %cst_18 = arith.constant 1.000000e+00 : f32
    %22 = vector.broadcast %cst_18 : f32 to vector<2x32xf32>
    %23 = arith.addf %21, %22 : vector<2x32xf32>
    %cst_19 = arith.constant 5.000000e-01 : f32
    %24 = vector.broadcast %cst_19 : f32 to vector<2x32xf32>
    %25 = arith.mulf %24, %23 : vector<2x32xf32>
    %26 = vector.extract_strided_slice %17 {offsets = [0, 32], sizes = [2, 32], strides = [1, 1]} : vector<2x128xf32> to vector<2x32xf32>
    %cst_20 = arith.constant 5.000000e-01 : f32
    %27 = vector.broadcast %cst_20 : f32 to vector<2x32xf32>
    %28 = arith.mulf %27, %26 : vector<2x32xf32>
    %29 = math.tanh %28 : vector<2x32xf32>
    %cst_21 = arith.constant 1.000000e+00 : f32
    %30 = vector.broadcast %cst_21 : f32 to vector<2x32xf32>
    %31 = arith.addf %29, %30 : vector<2x32xf32>
    %cst_22 = arith.constant 5.000000e-01 : f32
    %32 = vector.broadcast %cst_22 : f32 to vector<2x32xf32>
    %33 = arith.mulf %32, %31 : vector<2x32xf32>
    %34 = vector.extract_strided_slice %17 {offsets = [0, 64], sizes = [2, 32], strides = [1, 1]} : vector<2x128xf32> to vector<2x32xf32>
    %35 = math.tanh %34 : vector<2x32xf32>
    %36 = vector.extract_strided_slice %17 {offsets = [0, 96], sizes = [2, 32], strides = [1, 1]} : vector<2x128xf32> to vector<2x32xf32>
    %cst_23 = arith.constant 5.000000e-01 : f32
    %37 = vector.broadcast %cst_23 : f32 to vector<2x32xf32>
    %38 = arith.mulf %37, %36 : vector<2x32xf32>
    %39 = math.tanh %38 : vector<2x32xf32>
    %cst_24 = arith.constant 1.000000e+00 : f32
    %40 = vector.broadcast %cst_24 : f32 to vector<2x32xf32>
    %41 = arith.addf %39, %40 : vector<2x32xf32>
    %cst_25 = arith.constant 5.000000e-01 : f32
    %42 = vector.broadcast %cst_25 : f32 to vector<2x32xf32>
    %43 = arith.mulf %42, %41 : vector<2x32xf32>
    %44 = arith.mulf %33, %12 : vector<2x32xf32>
    %45 = arith.mulf %25, %35 : vector<2x32xf32>
    %46 = arith.addf %44, %45 : vector<2x32xf32>
    %47 = math.tanh %46 : vector<2x32xf32>
    %48 = arith.mulf %43, %47 : vector<2x32xf32>
    %49 = arith.truncf %48 : vector<2x32xf32> to vector<2x32xbf16>
    %c0_26 = arith.constant 0 : index
    %c0_27 = arith.constant 0 : index
    %50 = vector.load %arg5[%c0_26, %c0_27] : memref<16x32xbf16, #tpu.memory_space<vmem>>, vector<2x32xbf16>
    tpu.vector_store %arg5[%c0_26, %c0_27], %49 {strides = array<i32>} : memref<16x32xbf16, #tpu.memory_space<vmem>>, vector<2x32xbf16>,
    %c2 = arith.constant 2 : index
    %c0_28 = arith.constant 0 : index
    %51 = vector.load %arg8[%c2, %c0_28] : memref<16x128xf32, #tpu.memory_space<vmem>>, vector<2x128xf32>
    %52 = arith.truncf %48 : vector<2x32xf32> to vector<2x32xbf16>
    %c0_29 = arith.constant 0 : index
    %c0_30 = arith.constant 0 : index
    %53 = vector.load %arg4[%c0_29, %c0_30] : memref<32x128xbf16, #tpu.memory_space<vmem>>, vector<32x128xbf16>
    %cst_31 = arith.constant dense<0.000000e+00> : vector<2x128xf32>
    %54 = tpu.matmul %52, %53, %cst_31 {dimension_numbers = #tpu.dot_dimension_numbers<[1], [0], [0], [1], [0, 0, 1, 1], [], []>} : vector<2x32xbf16>, vector<32x128xbf16>, vector<2x128xf32> -> vector<2x128xf32>
    %55 = arith.addf %51, %54 : vector<2x128xf32>
    %56 = vector.extract_strided_slice %55 {offsets = [0, 0], sizes = [2, 32], strides = [1, 1]} : vector<2x128xf32> to vector<2x32xf32>
    %cst_32 = arith.constant 5.000000e-01 : f32
    %57 = vector.broadcast %cst_32 : f32 to vector<2x32xf32>
    %58 = arith.mulf %57, %56 : vector<2x32xf32>
    %59 = math.tanh %58 : vector<2x32xf32>
    %cst_33 = arith.constant 1.000000e+00 : f32
    %60 = vector.broadcast %cst_33 : f32 to vector<2x32xf32>
    %61 = arith.addf %59, %60 : vector<2x32xf32>
    %cst_34 = arith.constant 5.000000e-01 : f32
    %62 = vector.broadcast %cst_34 : f32 to vector<2x32xf32>
    %63 = arith.mulf %62, %61 : vector<2x32xf32>
    %64 = vector.extract_strided_slice %55 {offsets = [0, 32], sizes = [2, 32], strides = [1, 1]} : vector<2x128xf32> to vector<2x32xf32>
    %cst_35 = arith.constant 5.000000e-01 : f32
    %65 = vector.broadcast %cst_35 : f32 to vector<2x32xf32>
    %66 = arith.mulf %65, %64 : vector<2x32xf32>
    %67 = math.tanh %66 : vector<2x32xf32>
    %cst_36 = arith.constant 1.000000e+00 : f32
    %68 = vector.broadcast %cst_36 : f32 to vector<2x32xf32>
    %69 = arith.addf %67, %68 : vector<2x32xf32>
    %cst_37 = arith.constant 5.000000e-01 : f32
    %70 = vector.broadcast %cst_37 : f32 to vector<2x32xf32>
    %71 = arith.mulf %70, %69 : vector<2x32xf32>
    %72 = vector.extract_strided_slice %55 {offsets = [0, 64], sizes = [2, 32], strides = [1, 1]} : vector<2x128xf32> to vector<2x32xf32>
    %73 = math.tanh %72 : vector<2x32xf32>
    %74 = vector.extract_strided_slice %55 {offsets = [0, 96], sizes = [2, 32], strides = [1, 1]} : vector<2x128xf32> to vector<2x32xf32>
    %cst_38 = arith.constant 5.000000e-01 : f32
    %75 = vector.broadcast %cst_38 : f32 to vector<2x32xf32>
    %76 = arith.mulf %75, %74 : vector<2x32xf32>
    %77 = math.tanh %76 : vector<2x32xf32>
    %cst_39 = arith.constant 1.000000e+00 : f32
    %78 = vector.broadcast %cst_39 : f32 to vector<2x32xf32>
    %79 = arith.addf %77, %78 : vector<2x32xf32>
    %cst_40 = arith.constant 5.000000e-01 : f32
    %80 = vector.broadcast %cst_40 : f32 to vector<2x32xf32>
    %81 = arith.mulf %80, %79 : vector<2x32xf32>
    %82 = arith.mulf %71, %46 : vector<2x32xf32>
    %83 = arith.mulf %63, %73 : vector<2x32xf32>
    %84 = arith.addf %82, %83 : vector<2x32xf32>
    %85 = math.tanh %84 : vector<2x32xf32>
    %86 = arith.mulf %81, %85 : vector<2x32xf32>
    %87 = arith.truncf %86 : vector<2x32xf32> to vector<2x32xbf16>
    %c2_41 = arith.constant 2 : index
    %c0_42 = arith.constant 0 : index
    %88 = vector.load %arg5[%c2_41, %c0_42] : memref<16x32xbf16, #tpu.memory_space<vmem>>, vector<2x32xbf16>
    tpu.vector_store %arg5[%c2_41, %c0_42], %87 {strides = array<i32>} : memref<16x32xbf16, #tpu.memory_space<vmem>>, vector<2x32xbf16>,
    %c4 = arith.constant 4 : index
    %c0_43 = arith.constant 0 : index
    %89 = vector.load %arg8[%c4, %c0_43] : memref<16x128xf32, #tpu.memory_space<vmem>>, vector<2x128xf32>
    %90 = arith.truncf %86 : vector<2x32xf32> to vector<2x32xbf16>
    %c0_44 = arith.constant 0 : index
    %c0_45 = arith.constant 0 : index
    %91 = vector.load %arg4[%c0_44, %c0_45] : memref<32x128xbf16, #tpu.memory_space<vmem>>, vector<32x128xbf16>
    %cst_46 = arith.constant dense<0.000000e+00> : vector<2x128xf32>
    %92 = tpu.matmul %90, %91, %cst_46 {dimension_numbers = #tpu.dot_dimension_numbers<[1], [0], [0], [1], [0, 0, 1, 1], [], []>} : vector<2x32xbf16>, vector<32x128xbf16>, vector<2x128xf32> -> vector<2x128xf32>
    %93 = arith.addf %89, %92 : vector<2x128xf32>
    %94 = vector.extract_strided_slice %93 {offsets = [0, 0], sizes = [2, 32], strides = [1, 1]} : vector<2x128xf32> to vector<2x32xf32>
    %cst_47 = arith.constant 5.000000e-01 : f32
    %95 = vector.broadcast %cst_47 : f32 to vector<2x32xf32>
    %96 = arith.mulf %95, %94 : vector<2x32xf32>
    %97 = math.tanh %96 : vector<2x32xf32>
    %cst_48 = arith.constant 1.000000e+00 : f32
    %98 = vector.broadcast %cst_48 : f32 to vector<2x32xf32>
    %99 = arith.addf %97, %98 : vector<2x32xf32>
    %cst_49 = arith.constant 5.000000e-01 : f32
    %100 = vector.broadcast %cst_49 : f32 to vector<2x32xf32>
    %101 = arith.mulf %100, %99 : vector<2x32xf32>
    %102 = vector.extract_strided_slice %93 {offsets = [0, 32], sizes = [2, 32], strides = [1, 1]} : vector<2x128xf32> to vector<2x32xf32>
    %cst_50 = arith.constant 5.000000e-01 : f32
    %103 = vector.broadcast %cst_50 : f32 to vector<2x32xf32>
    %104 = arith.mulf %103, %102 : vector<2x32xf32>
    %105 = math.tanh %104 : vector<2x32xf32>
    %cst_51 = arith.constant 1.000000e+00 : f32
    %106 = vector.broadcast %cst_51 : f32 to vector<2x32xf32>
    %107 = arith.addf %105, %106 : vector<2x32xf32>
    %cst_52 = arith.constant 5.000000e-01 : f32
    %108 = vector.broadcast %cst_52 : f32 to vector<2x32xf32>
    %109 = arith.mulf %108, %107 : vector<2x32xf32>
    %110 = vector.extract_strided_slice %93 {offsets = [0, 64], sizes = [2, 32], strides = [1, 1]} : vector<2x128xf32> to vector<2x32xf32>
    %111 = math.tanh %110 : vector<2x32xf32>
    %112 = vector.extract_strided_slice %93 {offsets = [0, 96], sizes = [2, 32], strides = [1, 1]} : vector<2x128xf32> to vector<2x32xf32>
    %cst_53 = arith.constant 5.000000e-01 : f32
    %113 = vector.broadcast %cst_53 : f32 to vector<2x32xf32>
    %114 = arith.mulf %113, %112 : vector<2x32xf32>
    %115 = math.tanh %114 : vector<2x32xf32>
    %cst_54 = arith.constant 1.000000e+00 : f32
    %116 = vector.broadcast %cst_54 : f32 to vector<2x32xf32>
    %117 = arith.addf %115, %116 : vector<2x32xf32>
    %cst_55 = arith.constant 5.000000e-01 : f32
    %118 = vector.broadcast %cst_55 : f32 to vector<2x32xf32>
    %119 = arith.mulf %118, %117 : vector<2x32xf32>
    %120 = arith.mulf %109, %84 : vector<2x32xf32>
    %121 = arith.mulf %101, %111 : vector<2x32xf32>
    %122 = arith.addf %120, %121 : vector<2x32xf32>
    %123 = math.tanh %122 : vector<2x32xf32>
    %124 = arith.mulf %119, %123 : vector<2x32xf32>
    %125 = arith.truncf %124 : vector<2x32xf32> to vector<2x32xbf16>
    %c4_56 = arith.constant 4 : index
    %c0_57 = arith.constant 0 : index
    %126 = vector.load %arg5[%c4_56, %c0_57] : memref<16x32xbf16, #tpu.memory_space<vmem>>, vector<2x32xbf16>
    tpu.vector_store %arg5[%c4_56, %c0_57], %125 {strides = array<i32>} : memref<16x32xbf16, #tpu.memory_space<vmem>>, vector<2x32xbf16>,
    %c6 = arith.constant 6 : index
    %c0_58 = arith.constant 0 : index
    %127 = vector.load %arg8[%c6, %c0_58] : memref<16x128xf32, #tpu.memory_space<vmem>>, vector<2x128xf32>
    %128 = arith.truncf %124 : vector<2x32xf32> to vector<2x32xbf16>
    %c0_59 = arith.constant 0 : index
    %c0_60 = arith.constant 0 : index
    %129 = vector.load %arg4[%c0_59, %c0_60] : memref<32x128xbf16, #tpu.memory_space<vmem>>, vector<32x128xbf16>
    %cst_61 = arith.constant dense<0.000000e+00> : vector<2x128xf32>
    %130 = tpu.matmul %128, %129, %cst_61 {dimension_numbers = #tpu.dot_dimension_numbers<[1], [0], [0], [1], [0, 0, 1, 1], [], []>} : vector<2x32xbf16>, vector<32x128xbf16>, vector<2x128xf32> -> vector<2x128xf32>
    %131 = arith.addf %127, %130 : vector<2x128xf32>
    %132 = vector.extract_strided_slice %131 {offsets = [0, 0], sizes = [2, 32], strides = [1, 1]} : vector<2x128xf32> to vector<2x32xf32>
    %cst_62 = arith.constant 5.000000e-01 : f32
    %133 = vector.broadcast %cst_62 : f32 to vector<2x32xf32>
    %134 = arith.mulf %133, %132 : vector<2x32xf32>
    %135 = math.tanh %134 : vector<2x32xf32>
    %cst_63 = arith.constant 1.000000e+00 : f32
    %136 = vector.broadcast %cst_63 : f32 to vector<2x32xf32>
    %137 = arith.addf %135, %136 : vector<2x32xf32>
    %cst_64 = arith.constant 5.000000e-01 : f32
    %138 = vector.broadcast %cst_64 : f32 to vector<2x32xf32>
    %139 = arith.mulf %138, %137 : vector<2x32xf32>
    %140 = vector.extract_strided_slice %131 {offsets = [0, 32], sizes = [2, 32], strides = [1, 1]} : vector<2x128xf32> to vector<2x32xf32>
    %cst_65 = arith.constant 5.000000e-01 : f32
    %141 = vector.broadcast %cst_65 : f32 to vector<2x32xf32>
    %142 = arith.mulf %141, %140 : vector<2x32xf32>
    %143 = math.tanh %142 : vector<2x32xf32>
    %cst_66 = arith.constant 1.000000e+00 : f32
    %144 = vector.broadcast %cst_66 : f32 to vector<2x32xf32>
    %145 = arith.addf %143, %144 : vector<2x32xf32>
    %cst_67 = arith.constant 5.000000e-01 : f32
    %146 = vector.broadcast %cst_67 : f32 to vector<2x32xf32>
    %147 = arith.mulf %146, %145 : vector<2x32xf32>
    %148 = vector.extract_strided_slice %131 {offsets = [0, 64], sizes = [2, 32], strides = [1, 1]} : vector<2x128xf32> to vector<2x32xf32>
    %149 = math.tanh %148 : vector<2x32xf32>
    %150 = vector.extract_strided_slice %131 {offsets = [0, 96], sizes = [2, 32], strides = [1, 1]} : vector<2x128xf32> to vector<2x32xf32>
    %cst_68 = arith.constant 5.000000e-01 : f32
    %151 = vector.broadcast %cst_68 : f32 to vector<2x32xf32>
    %152 = arith.mulf %151, %150 : vector<2x32xf32>
    %153 = math.tanh %152 : vector<2x32xf32>
    %cst_69 = arith.constant 1.000000e+00 : f32
    %154 = vector.broadcast %cst_69 : f32 to vector<2x32xf32>
    %155 = arith.addf %153, %154 : vector<2x32xf32>
    %cst_70 = arith.constant 5.000000e-01 : f32
    %156 = vector.broadcast %cst_70 : f32 to vector<2x32xf32>
    %157 = arith.mulf %156, %155 : vector<2x32xf32>
    %158 = arith.mulf %147, %122 : vector<2x32xf32>
    %159 = arith.mulf %139, %149 : vector<2x32xf32>
    %160 = arith.addf %158, %159 : vector<2x32xf32>
    %161 = math.tanh %160 : vector<2x32xf32>
    %162 = arith.mulf %157, %161 : vector<2x32xf32>
    %163 = arith.truncf %162 : vector<2x32xf32> to vector<2x32xbf16>
    %c6_71 = arith.constant 6 : index
    %c0_72 = arith.constant 0 : index
    %164 = vector.load %arg5[%c6_71, %c0_72] : memref<16x32xbf16, #tpu.memory_space<vmem>>, vector<2x32xbf16>
    tpu.vector_store %arg5[%c6_71, %c0_72], %163 {strides = array<i32>} : memref<16x32xbf16, #tpu.memory_space<vmem>>, vector<2x32xbf16>,
    %c8 = arith.constant 8 : index
    %c0_73 = arith.constant 0 : index
    %165 = vector.load %arg8[%c8, %c0_73] : memref<16x128xf32, #tpu.memory_space<vmem>>, vector<2x128xf32>
    %166 = arith.truncf %162 : vector<2x32xf32> to vector<2x32xbf16>
    %c0_74 = arith.constant 0 : index
    %c0_75 = arith.constant 0 : index
    %167 = vector.load %arg4[%c0_74, %c0_75] : memref<32x128xbf16, #tpu.memory_space<vmem>>, vector<32x128xbf16>
    %cst_76 = arith.constant dense<0.000000e+00> : vector<2x128xf32>
    %168 = tpu.matmul %166, %167, %cst_76 {dimension_numbers = #tpu.dot_dimension_numbers<[1], [0], [0], [1], [0, 0, 1, 1], [], []>} : vector<2x32xbf16>, vector<32x128xbf16>, vector<2x128xf32> -> vector<2x128xf32>
    %169 = arith.addf %165, %168 : vector<2x128xf32>
    %170 = vector.extract_strided_slice %169 {offsets = [0, 0], sizes = [2, 32], strides = [1, 1]} : vector<2x128xf32> to vector<2x32xf32>
    %cst_77 = arith.constant 5.000000e-01 : f32
    %171 = vector.broadcast %cst_77 : f32 to vector<2x32xf32>
    %172 = arith.mulf %171, %170 : vector<2x32xf32>
    %173 = math.tanh %172 : vector<2x32xf32>
    %cst_78 = arith.constant 1.000000e+00 : f32
    %174 = vector.broadcast %cst_78 : f32 to vector<2x32xf32>
    %175 = arith.addf %173, %174 : vector<2x32xf32>
    %cst_79 = arith.constant 5.000000e-01 : f32
    %176 = vector.broadcast %cst_79 : f32 to vector<2x32xf32>
    %177 = arith.mulf %176, %175 : vector<2x32xf32>
    %178 = vector.extract_strided_slice %169 {offsets = [0, 32], sizes = [2, 32], strides = [1, 1]} : vector<2x128xf32> to vector<2x32xf32>
    %cst_80 = arith.constant 5.000000e-01 : f32
    %179 = vector.broadcast %cst_80 : f32 to vector<2x32xf32>
    %180 = arith.mulf %179, %178 : vector<2x32xf32>
    %181 = math.tanh %180 : vector<2x32xf32>
    %cst_81 = arith.constant 1.000000e+00 : f32
    %182 = vector.broadcast %cst_81 : f32 to vector<2x32xf32>
    %183 = arith.addf %181, %182 : vector<2x32xf32>
    %cst_82 = arith.constant 5.000000e-01 : f32
    %184 = vector.broadcast %cst_82 : f32 to vector<2x32xf32>
    %185 = arith.mulf %184, %183 : vector<2x32xf32>
    %186 = vector.extract_strided_slice %169 {offsets = [0, 64], sizes = [2, 32], strides = [1, 1]} : vector<2x128xf32> to vector<2x32xf32>
    %187 = math.tanh %186 : vector<2x32xf32>
    %188 = vector.extract_strided_slice %169 {offsets = [0, 96], sizes = [2, 32], strides = [1, 1]} : vector<2x128xf32> to vector<2x32xf32>
    %cst_83 = arith.constant 5.000000e-01 : f32
    %189 = vector.broadcast %cst_83 : f32 to vector<2x32xf32>
    %190 = arith.mulf %189, %188 : vector<2x32xf32>
    %191 = math.tanh %190 : vector<2x32xf32>
    %cst_84 = arith.constant 1.000000e+00 : f32
    %192 = vector.broadcast %cst_84 : f32 to vector<2x32xf32>
    %193 = arith.addf %191, %192 : vector<2x32xf32>
    %cst_85 = arith.constant 5.000000e-01 : f32
    %194 = vector.broadcast %cst_85 : f32 to vector<2x32xf32>
    %195 = arith.mulf %194, %193 : vector<2x32xf32>
    %196 = arith.mulf %185, %160 : vector<2x32xf32>
    %197 = arith.mulf %177, %187 : vector<2x32xf32>
    %198 = arith.addf %196, %197 : vector<2x32xf32>
    %199 = math.tanh %198 : vector<2x32xf32>
    %200 = arith.mulf %195, %199 : vector<2x32xf32>
    %201 = arith.truncf %200 : vector<2x32xf32> to vector<2x32xbf16>
    %c8_86 = arith.constant 8 : index
    %c0_87 = arith.constant 0 : index
    %202 = vector.load %arg5[%c8_86, %c0_87] : memref<16x32xbf16, #tpu.memory_space<vmem>>, vector<2x32xbf16>
    tpu.vector_store %arg5[%c8_86, %c0_87], %201 {strides = array<i32>} : memref<16x32xbf16, #tpu.memory_space<vmem>>, vector<2x32xbf16>,
    %c10 = arith.constant 10 : index
    %c0_88 = arith.constant 0 : index
    %203 = vector.load %arg8[%c10, %c0_88] : memref<16x128xf32, #tpu.memory_space<vmem>>, vector<2x128xf32>
    %204 = arith.truncf %200 : vector<2x32xf32> to vector<2x32xbf16>
    %c0_89 = arith.constant 0 : index
    %c0_90 = arith.constant 0 : index
    %205 = vector.load %arg4[%c0_89, %c0_90] : memref<32x128xbf16, #tpu.memory_space<vmem>>, vector<32x128xbf16>
    %cst_91 = arith.constant dense<0.000000e+00> : vector<2x128xf32>
    %206 = tpu.matmul %204, %205, %cst_91 {dimension_numbers = #tpu.dot_dimension_numbers<[1], [0], [0], [1], [0, 0, 1, 1], [], []>} : vector<2x32xbf16>, vector<32x128xbf16>, vector<2x128xf32> -> vector<2x128xf32>
    %207 = arith.addf %203, %206 : vector<2x128xf32>
    %208 = vector.extract_strided_slice %207 {offsets = [0, 0], sizes = [2, 32], strides = [1, 1]} : vector<2x128xf32> to vector<2x32xf32>
    %cst_92 = arith.constant 5.000000e-01 : f32
    %209 = vector.broadcast %cst_92 : f32 to vector<2x32xf32>
    %210 = arith.mulf %209, %208 : vector<2x32xf32>
    %211 = math.tanh %210 : vector<2x32xf32>
    %cst_93 = arith.constant 1.000000e+00 : f32
    %212 = vector.broadcast %cst_93 : f32 to vector<2x32xf32>
    %213 = arith.addf %211, %212 : vector<2x32xf32>
    %cst_94 = arith.constant 5.000000e-01 : f32
    %214 = vector.broadcast %cst_94 : f32 to vector<2x32xf32>
    %215 = arith.mulf %214, %213 : vector<2x32xf32>
    %216 = vector.extract_strided_slice %207 {offsets = [0, 32], sizes = [2, 32], strides = [1, 1]} : vector<2x128xf32> to vector<2x32xf32>
    %cst_95 = arith.constant 5.000000e-01 : f32
    %217 = vector.broadcast %cst_95 : f32 to vector<2x32xf32>
    %218 = arith.mulf %217, %216 : vector<2x32xf32>
    %219 = math.tanh %218 : vector<2x32xf32>
    %cst_96 = arith.constant 1.000000e+00 : f32
    %220 = vector.broadcast %cst_96 : f32 to vector<2x32xf32>
    %221 = arith.addf %219, %220 : vector<2x32xf32>
    %cst_97 = arith.constant 5.000000e-01 : f32
    %222 = vector.broadcast %cst_97 : f32 to vector<2x32xf32>
    %223 = arith.mulf %222, %221 : vector<2x32xf32>
    %224 = vector.extract_strided_slice %207 {offsets = [0, 64], sizes = [2, 32], strides = [1, 1]} : vector<2x128xf32> to vector<2x32xf32>
    %225 = math.tanh %224 : vector<2x32xf32>
    %226 = vector.extract_strided_slice %207 {offsets = [0, 96], sizes = [2, 32], strides = [1, 1]} : vector<2x128xf32> to vector<2x32xf32>
    %cst_98 = arith.constant 5.000000e-01 : f32
    %227 = vector.broadcast %cst_98 : f32 to vector<2x32xf32>
    %228 = arith.mulf %227, %226 : vector<2x32xf32>
    %229 = math.tanh %228 : vector<2x32xf32>
    %cst_99 = arith.constant 1.000000e+00 : f32
    %230 = vector.broadcast %cst_99 : f32 to vector<2x32xf32>
    %231 = arith.addf %229, %230 : vector<2x32xf32>
    %cst_100 = arith.constant 5.000000e-01 : f32
    %232 = vector.broadcast %cst_100 : f32 to vector<2x32xf32>
    %233 = arith.mulf %232, %231 : vector<2x32xf32>
    %234 = arith.mulf %223, %198 : vector<2x32xf32>
    %235 = arith.mulf %215, %225 : vector<2x32xf32>
    %236 = arith.addf %234, %235 : vector<2x32xf32>
    %237 = math.tanh %236 : vector<2x32xf32>
    %238 = arith.mulf %233, %237 : vector<2x32xf32>
    %239 = arith.truncf %238 : vector<2x32xf32> to vector<2x32xbf16>
    %c10_101 = arith.constant 10 : index
    %c0_102 = arith.constant 0 : index
    %240 = vector.load %arg5[%c10_101, %c0_102] : memref<16x32xbf16, #tpu.memory_space<vmem>>, vector<2x32xbf16>
    tpu.vector_store %arg5[%c10_101, %c0_102], %239 {strides = array<i32>} : memref<16x32xbf16, #tpu.memory_space<vmem>>, vector<2x32xbf16>,
    %c12 = arith.constant 12 : index
    %c0_103 = arith.constant 0 : index
    %241 = vector.load %arg8[%c12, %c0_103] : memref<16x128xf32, #tpu.memory_space<vmem>>, vector<2x128xf32>
    %242 = arith.truncf %238 : vector<2x32xf32> to vector<2x32xbf16>
    %c0_104 = arith.constant 0 : index
    %c0_105 = arith.constant 0 : index
    %243 = vector.load %arg4[%c0_104, %c0_105] : memref<32x128xbf16, #tpu.memory_space<vmem>>, vector<32x128xbf16>
    %cst_106 = arith.constant dense<0.000000e+00> : vector<2x128xf32>
    %244 = tpu.matmul %242, %243, %cst_106 {dimension_numbers = #tpu.dot_dimension_numbers<[1], [0], [0], [1], [0, 0, 1, 1], [], []>} : vector<2x32xbf16>, vector<32x128xbf16>, vector<2x128xf32> -> vector<2x128xf32>
    %245 = arith.addf %241, %244 : vector<2x128xf32>
    %246 = vector.extract_strided_slice %245 {offsets = [0, 0], sizes = [2, 32], strides = [1, 1]} : vector<2x128xf32> to vector<2x32xf32>
    %cst_107 = arith.constant 5.000000e-01 : f32
    %247 = vector.broadcast %cst_107 : f32 to vector<2x32xf32>
    %248 = arith.mulf %247, %246 : vector<2x32xf32>
    %249 = math.tanh %248 : vector<2x32xf32>
    %cst_108 = arith.constant 1.000000e+00 : f32
    %250 = vector.broadcast %cst_108 : f32 to vector<2x32xf32>
    %251 = arith.addf %249, %250 : vector<2x32xf32>
    %cst_109 = arith.constant 5.000000e-01 : f32
    %252 = vector.broadcast %cst_109 : f32 to vector<2x32xf32>
    %253 = arith.mulf %252, %251 : vector<2x32xf32>
    %254 = vector.extract_strided_slice %245 {offsets = [0, 32], sizes = [2, 32], strides = [1, 1]} : vector<2x128xf32> to vector<2x32xf32>
    %cst_110 = arith.constant 5.000000e-01 : f32
    %255 = vector.broadcast %cst_110 : f32 to vector<2x32xf32>
    %256 = arith.mulf %255, %254 : vector<2x32xf32>
    %257 = math.tanh %256 : vector<2x32xf32>
    %cst_111 = arith.constant 1.000000e+00 : f32
    %258 = vector.broadcast %cst_111 : f32 to vector<2x32xf32>
    %259 = arith.addf %257, %258 : vector<2x32xf32>
    %cst_112 = arith.constant 5.000000e-01 : f32
    %260 = vector.broadcast %cst_112 : f32 to vector<2x32xf32>
    %261 = arith.mulf %260, %259 : vector<2x32xf32>
    %262 = vector.extract_strided_slice %245 {offsets = [0, 64], sizes = [2, 32], strides = [1, 1]} : vector<2x128xf32> to vector<2x32xf32>
    %263 = math.tanh %262 : vector<2x32xf32>
    %264 = vector.extract_strided_slice %245 {offsets = [0, 96], sizes = [2, 32], strides = [1, 1]} : vector<2x128xf32> to vector<2x32xf32>
    %cst_113 = arith.constant 5.000000e-01 : f32
    %265 = vector.broadcast %cst_113 : f32 to vector<2x32xf32>
    %266 = arith.mulf %265, %264 : vector<2x32xf32>
    %267 = math.tanh %266 : vector<2x32xf32>
    %cst_114 = arith.constant 1.000000e+00 : f32
    %268 = vector.broadcast %cst_114 : f32 to vector<2x32xf32>
    %269 = arith.addf %267, %268 : vector<2x32xf32>
    %cst_115 = arith.constant 5.000000e-01 : f32
    %270 = vector.broadcast %cst_115 : f32 to vector<2x32xf32>
    %271 = arith.mulf %270, %269 : vector<2x32xf32>
    %272 = arith.mulf %261, %236 : vector<2x32xf32>
    %273 = arith.mulf %253, %263 : vector<2x32xf32>
    %274 = arith.addf %272, %273 : vector<2x32xf32>
    %275 = math.tanh %274 : vector<2x32xf32>
    %276 = arith.mulf %271, %275 : vector<2x32xf32>
    %277 = arith.truncf %276 : vector<2x32xf32> to vector<2x32xbf16>
    %c12_116 = arith.constant 12 : index
    %c0_117 = arith.constant 0 : index
    %278 = vector.load %arg5[%c12_116, %c0_117] : memref<16x32xbf16, #tpu.memory_space<vmem>>, vector<2x32xbf16>
    tpu.vector_store %arg5[%c12_116, %c0_117], %277 {strides = array<i32>} : memref<16x32xbf16, #tpu.memory_space<vmem>>, vector<2x32xbf16>,
    %c14 = arith.constant 14 : index
    %c0_118 = arith.constant 0 : index
    %279 = vector.load %arg8[%c14, %c0_118] : memref<16x128xf32, #tpu.memory_space<vmem>>, vector<2x128xf32>
    %280 = arith.truncf %276 : vector<2x32xf32> to vector<2x32xbf16>
    %c0_119 = arith.constant 0 : index
    %c0_120 = arith.constant 0 : index
    %281 = vector.load %arg4[%c0_119, %c0_120] : memref<32x128xbf16, #tpu.memory_space<vmem>>, vector<32x128xbf16>
    %cst_121 = arith.constant dense<0.000000e+00> : vector<2x128xf32>
    %282 = tpu.matmul %280, %281, %cst_121 {dimension_numbers = #tpu.dot_dimension_numbers<[1], [0], [0], [1], [0, 0, 1, 1], [], []>} : vector<2x32xbf16>, vector<32x128xbf16>, vector<2x128xf32> -> vector<2x128xf32>
    %283 = arith.addf %279, %282 : vector<2x128xf32>
    %284 = vector.extract_strided_slice %283 {offsets = [0, 0], sizes = [2, 32], strides = [1, 1]} : vector<2x128xf32> to vector<2x32xf32>
    %cst_122 = arith.constant 5.000000e-01 : f32
    %285 = vector.broadcast %cst_122 : f32 to vector<2x32xf32>
    %286 = arith.mulf %285, %284 : vector<2x32xf32>
    %287 = math.tanh %286 : vector<2x32xf32>
    %cst_123 = arith.constant 1.000000e+00 : f32
    %288 = vector.broadcast %cst_123 : f32 to vector<2x32xf32>
    %289 = arith.addf %287, %288 : vector<2x32xf32>
    %cst_124 = arith.constant 5.000000e-01 : f32
    %290 = vector.broadcast %cst_124 : f32 to vector<2x32xf32>
    %291 = arith.mulf %290, %289 : vector<2x32xf32>
    %292 = vector.extract_strided_slice %283 {offsets = [0, 32], sizes = [2, 32], strides = [1, 1]} : vector<2x128xf32> to vector<2x32xf32>
    %cst_125 = arith.constant 5.000000e-01 : f32
    %293 = vector.broadcast %cst_125 : f32 to vector<2x32xf32>
    %294 = arith.mulf %293, %292 : vector<2x32xf32>
    %295 = math.tanh %294 : vector<2x32xf32>
    %cst_126 = arith.constant 1.000000e+00 : f32
    %296 = vector.broadcast %cst_126 : f32 to vector<2x32xf32>
    %297 = arith.addf %295, %296 : vector<2x32xf32>
    %cst_127 = arith.constant 5.000000e-01 : f32
    %298 = vector.broadcast %cst_127 : f32 to vector<2x32xf32>
    %299 = arith.mulf %298, %297 : vector<2x32xf32>
    %300 = vector.extract_strided_slice %283 {offsets = [0, 64], sizes = [2, 32], strides = [1, 1]} : vector<2x128xf32> to vector<2x32xf32>
    %301 = math.tanh %300 : vector<2x32xf32>
    %302 = vector.extract_strided_slice %283 {offsets = [0, 96], sizes = [2, 32], strides = [1, 1]} : vector<2x128xf32> to vector<2x32xf32>
    %cst_128 = arith.constant 5.000000e-01 : f32
    %303 = vector.broadcast %cst_128 : f32 to vector<2x32xf32>
    %304 = arith.mulf %303, %302 : vector<2x32xf32>
    %305 = math.tanh %304 : vector<2x32xf32>
    %cst_129 = arith.constant 1.000000e+00 : f32
    %306 = vector.broadcast %cst_129 : f32 to vector<2x32xf32>
    %307 = arith.addf %305, %306 : vector<2x32xf32>
    %cst_130 = arith.constant 5.000000e-01 : f32
    %308 = vector.broadcast %cst_130 : f32 to vector<2x32xf32>
    %309 = arith.mulf %308, %307 : vector<2x32xf32>
    %310 = arith.mulf %299, %274 : vector<2x32xf32>
    %311 = arith.mulf %291, %301 : vector<2x32xf32>
    %312 = arith.addf %310, %311 : vector<2x32xf32>
    %313 = math.tanh %312 : vector<2x32xf32>
    %314 = arith.mulf %309, %313 : vector<2x32xf32>
    %315 = arith.truncf %314 : vector<2x32xf32> to vector<2x32xbf16>
    %c14_131 = arith.constant 14 : index
    %c0_132 = arith.constant 0 : index
    %316 = vector.load %arg5[%c14_131, %c0_132] : memref<16x32xbf16, #tpu.memory_space<vmem>>, vector<2x32xbf16>
    tpu.vector_store %arg5[%c14_131, %c0_132], %315 {strides = array<i32>} : memref<16x32xbf16, #tpu.memory_space<vmem>>, vector<2x32xbf16>,
    %c0_133 = arith.constant 0 : index
    %c0_134 = arith.constant 0 : index
    %317 = vector.load %arg6[%c0_133, %c0_134] : memref<2x32xf32, #tpu.memory_space<vmem>>, vector<2x32xf32>
    tpu.vector_store %arg6[%c0_133, %c0_134], %314 {strides = array<i32>} : memref<2x32xf32, #tpu.memory_space<vmem>>, vector<2x32xf32>,
    %c0_135 = arith.constant 0 : index
    %c0_136 = arith.constant 0 : index
    %318 = vector.load %arg7[%c0_135, %c0_136] : memref<2x32xf32, #tpu.memory_space<vmem>>, vector<2x32xf32>
    tpu.vector_store %arg7[%c0_135, %c0_136], %312 {strides = array<i32>} : memref<2x32xf32, #tpu.memory_space<vmem>>, vector<2x32xf32>,
    return
  }
  func.func @transform_0(%arg0: i32) -> (i32, i32) {
    %c0_i32 = arith.constant 0 : i32
    %c0_i32_0 = arith.constant 0 : i32
    return %arg0, %c0_i32 : i32, i32
  }
  func.func @transform_1(%arg0: i32) -> (i32, i32) {
    %c0_i32 = arith.constant 0 : i32
    %c0_i32_0 = arith.constant 0 : i32
    %c0_i32_1 = arith.constant 0 : i32
    return %c0_i32, %c0_i32_0 : i32, i32
  }
  func.func @transform_2(%arg0: i32) -> (i32, i32) {
    %c0_i32 = arith.constant 0 : i32
    %c0_i32_0 = arith.constant 0 : i32
    %c0_i32_1 = arith.constant 0 : i32
    return %c0_i32, %c0_i32_0 : i32, i32
  }
  func.func @transform_3(%arg0: i32) -> (i32, i32) {
    %c0_i32 = arith.constant 0 : i32
    %c0_i32_0 = arith.constant 0 : i32
    %c0_i32_1 = arith.constant 0 : i32
    return %c0_i32, %c0_i32_0 : i32, i32
  }
  func.func @transform_4(%arg0: i32) -> (i32, i32) {
    %c0_i32 = arith.constant 0 : i32
    %c0_i32_0 = arith.constant 0 : i32
    return %arg0, %c0_i32 : i32, i32
  }
}

</mosaic_0001>

<bundles_post_ra>
// kernel: tpu_custom_call.1
= control target key start
LH: loop header
LB: loop body
LE: loop exit
PB: predicated region body
PF: predicated region fallthrough
CT: control target
= control target key end

     0   :  { %9 = vsyncpa [#allocation6], 0  ;;  %s1082_s0 = inlined_call_operand.hbm [shape: f32[16,16], index: 0, kind: input, shape index: {}]   ;;  %s1083_s1 = inlined_call_operand.hbm [shape: bf16[16,128], index: 1, kind: input, shape index: {}]   ;;  %s1084_s2 = inlined_call_operand.vmem [shape: f32[1,128], index: 2, kind: input, shape index: {}]   ;;  %s1085_s3 = inlined_call_operand.hbm [shape: bf16[32,128], index: 3, kind: input, shape index: {}]   ;;  %s1086_s4 = inlined_call_operand.hbm [shape: bf16[16,32], index: 4, kind: output, shape index: {}]  }
   0x1   :  { %10 = vsyncpa [#allocation9], 0  ;;  %s29_s17 = sshll.u32 %s1083_s1, 4  ;;  %s30_s17 = int_to_ptr.hbm [resolvable:$true] %s29_s17 }
   0x2   :  { %11 = vsyncpa [#allocation7], 0  ;;  %s937_s18 = smov [#allocation8]   ;;  %s16_s22 = sshll.u32 %s1082_s0, 4  ;;  %s17_s22 = int_to_ptr.hbm [resolvable:$true] %s16_s22 }
   0x3   :  { %s31_s19 = sshll.u32 %s937_s18, 4  ;;  %s938_s23 = smov 64   ;;  %s32_s19 = int_to_ptr.vmem [resolvable:$true] %s31_s19 }
   0x4   :  { %s939_s24 = smov 4   ;;  %s940_s25 = smov [#allocation5]  }
   0x5   :  { %37 = dma.hbm_to_vmem [thread:$0]  %s30_s17, 128, %s32_s19, [#allocation9], %s938_s23, %s938_s23, %s939_s24  }
   0x6   :  { %s18_s26 = sshll.u32 %s940_s25, 4  ;;  %s941_s1 = smov 128   ;;  %s19_s26 = int_to_ptr.vmem [resolvable:$true] %s18_s26 }
   0x7   :  { %s942_s27 = smov 8   ;;  %s44_s30 = sshll.u32 %s1085_s3, 4  ;;  %s45_s30 = int_to_ptr.hbm [resolvable:$true] %s44_s30 }
   0x8   :  { %24 = dma.hbm_to_vmem [thread:$0]  %s17_s22, 256, %s19_s26, [#allocation6], %s941_s1, %s941_s1, %s942_s27  }
   0x9   :  { %s943_s5 = smov [#allocation10]  }
   0xa   :  { %s46_s0 = sshll.u32 %s943_s5, 4  ;;  %s47_s0 = int_to_ptr.vmem [resolvable:$true] %s46_s0 }
   0xb   :  { %52 = dma.hbm_to_vmem [thread:$0]  %s45_s30, 256, %s47_s0, [#allocation9], %s938_s23, %s938_s23, %s939_s24  }
   0xc   :  { %931 = dma.done.wait [#allocation6], 256  }
   0xd   :  { %932 = vsyncadd [#allocation6], 4294967040 }
   0xe   :  { %933 = dma.done.wait [#allocation9], 384  }
   0xf   :  { %934 = vsyncadd [#allocation9], 4294966912  ;;  %vm70_vm0 = vcmask 254976   ;;  %v944_v0 = vmov 0.0   ;;  %v758_v1 = vld [vmem:[#allocation8] sm:$0xff]  ;;  %v760_v2 = vld [vmem:[#allocation10 + $0x8] sm:$0xff] }
  0x10   :  { %71 = vst.msk [vmem:[#allocation2] sm:$0x3] %vm70_vm0, %v944_v0  ;;  %v73_v3 = vld [vmem:[#allocation5] sm:$0xff]  ;;  %v74_v4 = vld [vmem:[#allocation5 + $0x8] sm:$0xff]  ;;  %99 = vmatpush.bf16.msra.mxu0 %v758_v1  ;;  %138 = vmatpush.bf16.msra.mxu1 %v760_v2  ;;  %vm88_vm1 = vcmask 130048   ;;  %v759_v6 = vld [vmem:[#allocation10] sm:$0xff] }
  0x11   :  { %72 = vst.msk [vmem:[#allocation3] sm:$0x3] %vm70_vm0, %v944_v0  ;;  %v75_v5 = vpack.c.bf16 %v74_v4, %v73_v3  ;;  %vm128_vm2 = vcmask 261120   ;;  %v786_v9 = vld [vmem:[%s1084_s2] ss:$0 sm:$0xff]  ;;  %s945_s7 = smov 32  }
  0x12   :  { %v762_v31 = vld [vmem:[#allocation10 + $0x8] sm:$0xff]  ;;  %v761_v32 = vld [vmem:[#allocation10] sm:$0xff]  ;;  %vm177_vm3 = vcmask 253952   ;;  %vm381_vm4 = vcmask 257027   ;;  %vm313_vm5 = vcmask 256002   ;;  %s946_s2 = smov 96  }
  0x13   :  { %685 = vmatmul.msk.bf16.vlgmr.msra.gmra.mxu0 %vm88_vm1, %v75_v5  ;;  %209 = vmatpush.bf16.msra.mxu2 %v762_v31  ;;  %v764_v54 = vld [vmem:[#allocation10 + $0x8] sm:$0xff]  ;;  %v763_v55 = vld [vmem:[#allocation10] sm:$0xff]  ;;  %vm245_vm6 = vcmask 254977   ;;  %s947_s8 = smov [#allocation11]   ;;  %s667_s12 = sshll.u32 %s1086_s4, 4  ;;  %s668_s12 = int_to_ptr.hbm [resolvable:$true] %s667_s12 }
  0x14   :  { %139 = vmatpush.bf16.msra.mxu1 %v759_v6  ;;  %277 = vmatpush.bf16.msra.mxu3 %v764_v54  ;;  %s665_s9 = sshll.u32 %s947_s8, 4  ;;  %s666_s9 = int_to_ptr.vmem [resolvable:$true] %s665_s9 }
  0x17   :  { %v108_v7 = vld [vmem:[#allocation2] sm:$0x3]  ;;  %210 = vmatpush.bf16.msra.mxu2 %v761_v32 }
  0x18   :  { %v111_v8 = vpack.c.bf16 %v108_v7, %v108_v7  ;;  %v109_v19 = vld [vmem:[#allocation3] sm:$0x3]  ;;  %278 = vmatpush.bf16.msra.mxu3 %v763_v55 }
  0x1a   :  { %694 = vmatmul.msk.bf16.vlgmr.msra.gmra.mxu1 %vm128_vm2, %v111_v8 }
  0x90   :  { %v101_v10 = vpop.f32.mrf.mxu0 }
  0x91   :  { %v102_v11 = vadd.f32 %v786_v9, %v101_v10 }
  0x93   :  { %106 = vst [vmem:[#allocation4] sm:$0xff] %v102_v11 }
  0x97   :  { %v141_v12 = vpop.f32.mrf.mxu1 }
  0x98   :  { %v103_v13 = vpop.f32.mrf.mxu0 }
  0x99   :  { %v104_v14 = vadd.f32 %v786_v9, %v103_v13  ;;  %v766_v13 = vld [vmem:[#allocation10 + $0x8] sm:$0xff] }
  0x9a   :  { %v110_v15 = vld [vmem:[#allocation4] sm:$0x3]  ;;  %v179_v39 = vld [vmem:[#allocation4 + $0x2] sm:$0x3]  ;;  %v247_v62 = vld [vmem:[#allocation4 + $0x4] sm:$0x3]  ;;  %345 = vmatpush.bf16.msrb.mxu0 %v766_v13 }
  0x9b   :  { %v145_v16 = vadd.f32 %v141_v12, %v110_v15  ;;  %107 = vst [vmem:[#allocation4 + $0x8] sm:$0xff] %v104_v14  ;;  %v765_v14 = vld [vmem:[#allocation10] sm:$0xff] }
  0x9d   :  { %787 = vtanh.f32 %v145_v16  ;;  %v146_v20 = vmul.f32 0.5, %v145_v16 }
  0x9e   :  { %346 = vmatpush.bf16.msrb.mxu0 %v765_v14 }
  0x9f   :  { %v143_v17 = vpop.f32.mrf.mxu1  ;;  %789 = vtanh.f32 %v146_v20 }
  0xa3   :  { %v788_v18 = vpop.eup %787 }
  0xa4   :  { %157 = vrot.lane.b32.xlu0 %v788_v18, %s938_s23 }
  0xa5   :  { %v790_v21 = vpop.eup %789 }
  0xa6   :  { %v148_v22 = vadd.f32 1.0, %v790_v21  ;;  %v315_v21 = vld [vmem:[#allocation4 + $0x6] sm:$0x3] }
  0xa8   :  { %v149_v23 = vmul.f32 0.5, %v148_v22 }
  0xac   :  { %152 = vrot.lane.b32.xlu0 %v109_v19, %s945_s7 }
 0x116   :  { %v158_v24 = vpop.permute.xlu0 %157 }
 0x117   :  { %v160_v25 = vmul.f32 %v158_v24, %v149_v23 }
 0x119   :  { %162 = vrot.lane.b32.xlu1 %v160_v25, %s945_s7 }
 0x11e   :  { %v153_v26 = vpop.permute.xlu0 %152 }
 0x11f   :  { %v155_v27 = vmul.f32 %v153_v26, %v149_v23 }
 0x18b   :  { %v163_v28 = vpop.permute.xlu1 %162 }
 0x18c   :  { %v165_v29 = vadd.f32 %v163_v28, %v155_v27 }
 0x18e   :  { %791 = vtanh.f32 %v165_v29 }
 0x194   :  { %v792_v30 = vpop.eup %791 }
 0x195   :  { %168 = vrot.lane.b32.xlu1 %v792_v30, %s938_s23 }
 0x207   :  { %v169_v33 = vpop.permute.xlu1 %168 }
 0x208   :  { %v171_v34 = vmul.f32 %v169_v33, %v149_v23 }
 0x20a   :  { %v998_v35 = vpack.c.bf16 %v171_v34, %v171_v34 }
 0x20c   :  { %v184_v36 = vunpack.c.l.b16 %v998_v35 }
 0x20e   :  { %v185_v37 = vpack.c.b16 %v184_v36, %v184_v36 }
 0x210   :  { %186 = vrot.lane.b32.xlu2 %v185_v37, %s945_s7  ;;  %v768_v37 = vld [vmem:[#allocation10 + $0x8] sm:$0xff] }
 0x211   :  { %413 = vmatpush.bf16.msrb.mxu1 %v768_v37 }
 0x26a   :  { %v187_v38 = vpop.permute.xlu2 %186 }
 0x26b   :  { %703 = vmatmul.msk.bf16.vlgmr.msra.gmra.mxu2 %vm128_vm2, %v187_v38  ;;  %v767_v38 = vld [vmem:[#allocation10] sm:$0xff] }
 0x26c   :  { %414 = vmatpush.bf16.msrb.mxu1 %v767_v38 }
 0x2ee   :  { %v212_v40 = vpop.f32.mrf.mxu2 }
 0x2ef   :  { %v216_v41 = vadd.f32 %v212_v40, %v179_v39 }
 0x2f1   :  { %793 = vtanh.f32 %v216_v41  ;;  %v217_v44 = vmul.f32 0.5, %v216_v41 }
 0x2f3   :  { %795 = vtanh.f32 %v217_v44 }
 0x2f6   :  { %v214_v42 = vpop.f32.mrf.mxu2 }
 0x2f7   :  { %v794_v43 = vpop.eup %793 }
 0x2f8   :  { %224 = vrot.lane.b32.xlu2 %v794_v43, %s938_s23 }
 0x2f9   :  { %v796_v45 = vpop.eup %795 }
 0x2fa   :  { %v219_v46 = vadd.f32 1.0, %v796_v45  ;;  %v383_v45 = vld [vmem:[#allocation4 + $0x8] sm:$0x3] }
 0x2fc   :  { %v220_v47 = vmul.f32 0.5, %v219_v46 }
 0x2fe   :  { %v222_v50 = vmul.f32 %v220_v47, %v165_v29 }
 0x352   :  { %v225_v48 = vpop.permute.xlu2 %224 }
 0x353   :  { %v227_v49 = vmul.f32 %v225_v48, %v220_v47 }
 0x355   :  { %229 = vrot.lane.b32.xlu0 %v227_v49, %s945_s7 }
 0x3c7   :  { %v230_v51 = vpop.permute.xlu0 %229 }
 0x3c8   :  { %v232_v52 = vadd.f32 %v230_v51, %v222_v50 }
 0x3ca   :  { %797 = vtanh.f32 %v232_v52 }
 0x3d0   :  { %v798_v53 = vpop.eup %797 }
 0x3d1   :  { %235 = vrot.lane.b32.xlu1 %v798_v53, %s938_s23 }
 0x443   :  { %v236_v56 = vpop.permute.xlu1 %235 }
 0x444   :  { %v238_v57 = vmul.f32 %v236_v56, %v220_v47 }
 0x446   :  { %v1006_v58 = vpack.c.bf16 %v238_v57, %v238_v57 }
 0x448   :  { %v252_v59 = vunpack.c.l.b16 %v1006_v58 }
 0x44a   :  { %v253_v60 = vpack.c.b16 %v252_v59, %v252_v59 }
 0x44c   :  { %254 = vrot.lane.b32.xlu2 %v253_v60, %s945_s7 }
 0x4a6   :  { %v255_v61 = vpop.permute.xlu2 %254 }
 0x4a7   :  { %712 = vmatmul.msk.bf16.vlgmr.msra.gmra.mxu3 %vm128_vm2, %v255_v61  ;;  %v770_v61 = vld [vmem:[#allocation10 + $0x8] sm:$0xff] }
 0x4a8   :  { %479 = vmatpush.bf16.msrb.mxu2 %v770_v61 }
 0x52a   :  { %v280_v63 = vpop.f32.mrf.mxu3 }
 0x52b   :  { %v284_v0 = vadd.f32 %v280_v63, %v247_v62  ;;  %v769_v62 = vld [vmem:[#allocation10] sm:$0xff] }
 0x52c   :  { %480 = vmatpush.bf16.msrb.mxu2 %v769_v62 }
 0x52d   :  { %799 = vtanh.f32 %v284_v0  ;;  %v285_v3 = vmul.f32 0.5, %v284_v0 }
 0x52f   :  { %801 = vtanh.f32 %v285_v3 }
 0x532   :  { %v282_v1 = vpop.f32.mrf.mxu3 }
 0x533   :  { %v800_v2 = vpop.eup %799 }
 0x534   :  { %292 = vrot.lane.b32.xlu0 %v800_v2, %s938_s23 }
 0x535   :  { %v802_v4 = vpop.eup %801 }
 0x536   :  { %v287_v5 = vadd.f32 1.0, %v802_v4 }
 0x538   :  { %v288_v6 = vmul.f32 0.5, %v287_v5  ;;  %v449_v5 = vld [vmem:[#allocation4 + $0xa] sm:$0x3] }
 0x53a   :  { %v290_v9 = vmul.f32 %v288_v6, %v232_v52 }
 0x5a6   :  { %v293_v7 = vpop.permute.xlu0 %292 }
 0x5a7   :  { %v295_v8 = vmul.f32 %v293_v7, %v288_v6 }
 0x5a9   :  { %297 = vrot.lane.b32.xlu1 %v295_v8, %s945_s7 }
 0x61b   :  { %v298_v10 = vpop.permute.xlu1 %297 }
 0x61c   :  { %v300_v11 = vadd.f32 %v298_v10, %v290_v9 }
 0x61e   :  { %803 = vtanh.f32 %v300_v11 }
 0x624   :  { %v804_v12 = vpop.eup %803 }
 0x625   :  { %303 = vrot.lane.b32.xlu2 %v804_v12, %s938_s23 }
 0x67f   :  { %v304_v15 = vpop.permute.xlu2 %303 }
 0x680   :  { %v306_v16 = vmul.f32 %v304_v15, %v288_v6 }
 0x682   :  { %v1014_v17 = vpack.c.bf16 %v306_v16, %v306_v16 }
 0x684   :  { %v320_v18 = vunpack.c.l.b16 %v1014_v17 }
 0x686   :  { %v321_v19 = vpack.c.b16 %v320_v18, %v320_v18 }
 0x688   :  { %322 = vrot.lane.b32.xlu0 %v321_v19, %s945_s7 }
 0x6fa   :  { %v323_v20 = vpop.permute.xlu0 %322 }
 0x6fb   :  { %721 = vmatmul.msk.bf16.vlgmr.msrb.gmra.mxu0 %vm128_vm2, %v323_v20 }
 0x778   :  { %v348_v22 = vpop.f32.mrf.mxu0 }
 0x779   :  { %v352_v23 = vadd.f32 %v348_v22, %v315_v21  ;;  %v772_v21 = vld [vmem:[#allocation10 + $0x8] sm:$0xff]  ;;  %v771_v22 = vld [vmem:[#allocation10] sm:$0xff] }
 0x77a   :  { %546 = vmatpush.bf16.msrb.mxu3 %v772_v21 }
 0x77b   :  { %805 = vtanh.f32 %v352_v23  ;;  %v353_v26 = vmul.f32 0.5, %v352_v23 }
 0x77d   :  { %807 = vtanh.f32 %v353_v26 }
 0x77e   :  { %547 = vmatpush.bf16.msrb.mxu3 %v771_v22 }
 0x780   :  { %v350_v24 = vpop.f32.mrf.mxu0 }
 0x781   :  { %v806_v25 = vpop.eup %805 }
 0x782   :  { %360 = vrot.lane.b32.xlu1 %v806_v25, %s938_s23 }
 0x783   :  { %v808_v27 = vpop.eup %807 }
 0x784   :  { %v355_v28 = vadd.f32 1.0, %v808_v27 }
 0x786   :  { %v356_v29 = vmul.f32 0.5, %v355_v28 }
 0x788   :  { %v358_v32 = vmul.f32 %v356_v29, %v300_v11 }
 0x7f4   :  { %v361_v30 = vpop.permute.xlu1 %360 }
 0x7f5   :  { %v363_v31 = vmul.f32 %v361_v30, %v356_v29 }
 0x7f7   :  { %365 = vrot.lane.b32.xlu2 %v363_v31, %s945_s7 }
 0x851   :  { %v366_v33 = vpop.permute.xlu2 %365 }
 0x852   :  { %v368_v34 = vadd.f32 %v366_v33, %v358_v32 }
 0x854   :  { %809 = vtanh.f32 %v368_v34 }
 0x85a   :  { %v810_v36 = vpop.eup %809 }
 0x85b   :  { %371 = vrot.lane.b32.xlu0 %v810_v36, %s938_s23 }
 0x8cd   :  { %v372_v39 = vpop.permute.xlu0 %371 }
 0x8ce   :  { %v374_v40 = vmul.f32 %v372_v39, %v356_v29  ;;  %v516_v29 = vld [vmem:[#allocation4 + $0xc] sm:$0x3] }
 0x8d0   :  { %v1022_v41 = vpack.c.bf16 %v374_v40, %v374_v40 }
 0x8d2   :  { %v388_v42 = vunpack.c.l.b16 %v1022_v41 }
 0x8d4   :  { %v389_v43 = vpack.c.b16 %v388_v42, %v388_v42 }
 0x8d6   :  { %390 = vrot.lane.b32.xlu1 %v389_v43, %s945_s7 }
 0x948   :  { %v391_v44 = vpop.permute.xlu1 %390 }
 0x949   :  { %730 = vmatmul.msk.bf16.vlgmr.msrb.gmra.mxu1 %vm128_vm2, %v391_v44 }
 0x9c6   :  { %v416_v46 = vpop.f32.mrf.mxu1 }
 0x9c7   :  { %v420_v47 = vadd.f32 %v416_v46, %v383_v45  ;;  %v774_v46 = vld [vmem:[#allocation10 + $0x8] sm:$0xff] }
 0x9c8   :  { %613 = vmatpush.bf16.msra.mxu0 %v774_v46 }
 0x9c9   :  { %811 = vtanh.f32 %v420_v47  ;;  %v421_v50 = vmul.f32 0.5, %v420_v47  ;;  %v773_v47 = vld [vmem:[#allocation10] sm:$0xff] }
 0x9cb   :  { %813 = vtanh.f32 %v421_v50 }
 0x9cc   :  { %614 = vmatpush.bf16.msra.mxu0 %v773_v47 }
 0x9ce   :  { %v418_v48 = vpop.f32.mrf.mxu1 }
 0x9cf   :  { %v812_v49 = vpop.eup %811 }
 0x9d0   :  { %428 = vrot.lane.b32.xlu2 %v812_v49, %s938_s23 }
 0x9d1   :  { %v814_v51 = vpop.eup %813 }
 0x9d2   :  { %v423_v52 = vadd.f32 1.0, %v814_v51 }
 0x9d4   :  { %v424_v53 = vmul.f32 0.5, %v423_v52 }
 0x9d6   :  { %v426_v56 = vmul.f32 %v424_v53, %v368_v34 }
 0xa2a   :  { %v429_v54 = vpop.permute.xlu2 %428 }
 0xa2b   :  { %v431_v55 = vmul.f32 %v429_v54, %v424_v53  ;;  %v583_v54 = vld [vmem:[#allocation4 + $0xe] sm:$0x3] }
 0xa2d   :  { %433 = vrot.lane.b32.xlu0 %v431_v55, %s945_s7 }
 0xa9f   :  { %v434_v57 = vpop.permute.xlu0 %433 }
 0xaa0   :  { %v436_v59 = vadd.f32 %v434_v57, %v426_v56 }
 0xaa2   :  { %815 = vtanh.f32 %v436_v59 }
 0xaa8   :  { %v816_v60 = vpop.eup %815 }
 0xaa9   :  { %439 = vrot.lane.b32.xlu1 %v816_v60, %s938_s23  ;;  %v377_v60 = vrot.slane %v1022_v41, 5 }
 0xb1b   :  { %v440_v63 = vpop.permute.xlu1 %439 }
 0xb1c   :  { %v442_v0 = vmul.f32 %v440_v63, %v424_v53 }
 0xb1e   :  { %v1030_v1 = vpack.c.bf16 %v442_v0, %v442_v0 }
 0xb20   :  { %v454_v2 = vunpack.c.l.b16 %v1030_v1 }
 0xb22   :  { %v455_v3 = vpack.c.b16 %v454_v2, %v454_v2 }
 0xb24   :  { %456 = vrot.lane.b32.xlu2 %v455_v3, %s945_s7 }
 0xb7e   :  { %v457_v4 = vpop.permute.xlu2 %456 }
 0xb7f   :  { %739 = vmatmul.msk.bf16.vlgmr.msrb.gmra.mxu2 %vm128_vm2, %v457_v4 }
 0xc02   :  { %v482_v6 = vpop.f32.mrf.mxu2 }
 0xc03   :  { %v486_v7 = vadd.f32 %v482_v6, %v449_v5 }
 0xc05   :  { %817 = vtanh.f32 %v486_v7  ;;  %v487_v10 = vmul.f32 0.5, %v486_v7 }
 0xc07   :  { %819 = vtanh.f32 %v487_v10 }
 0xc0a   :  { %v484_v8 = vpop.f32.mrf.mxu2 }
 0xc0b   :  { %v818_v9 = vpop.eup %817 }
 0xc0c   :  { %494 = vrot.lane.b32.xlu0 %v818_v9, %s938_s23 }
 0xc0d   :  { %v820_v11 = vpop.eup %819 }
 0xc0e   :  { %v489_v12 = vadd.f32 1.0, %v820_v11  ;;  %v309_v11 = vrot.slane %v1014_v17, 6 }
 0xc10   :  { %v490_v13 = vmul.f32 0.5, %v489_v12 }
 0xc12   :  { %v492_v16 = vmul.f32 %v490_v13, %v436_v59 }
 0xc7e   :  { %v495_v14 = vpop.permute.xlu0 %494 }
 0xc7f   :  { %v497_v15 = vmul.f32 %v495_v14, %v490_v13 }
 0xc81   :  { %499 = vrot.lane.b32.xlu1 %v497_v15, %s945_s7 }
 0xcf3   :  { %v500_v18 = vpop.permute.xlu1 %499 }
 0xcf4   :  { %v502_v19 = vadd.f32 %v500_v18, %v492_v16 }
 0xcf6   :  { %821 = vtanh.f32 %v502_v19 }
 0xcfc   :  { %v822_v20 = vpop.eup %821 }
 0xcfd   :  { %505 = vrot.lane.b32.xlu2 %v822_v20, %s938_s23 }
 0xd57   :  { %v506_v23 = vpop.permute.xlu2 %505 }
 0xd58   :  { %v508_v24 = vmul.f32 %v506_v23, %v490_v13 }
 0xd5a   :  { %v1038_v25 = vpack.c.bf16 %v508_v24, %v508_v24 }
 0xd5c   :  { %v521_v26 = vunpack.c.l.b16 %v1038_v25  ;;  %v511_v12 = vrot.slane %v1038_v25, 7 }
 0xd5e   :  { %v522_v27 = vpack.c.b16 %v521_v26, %v521_v26 }
 0xd60   :  { %523 = vrot.lane.b32.xlu0 %v522_v27, %s945_s7 }
 0xdd2   :  { %v524_v28 = vpop.permute.xlu0 %523 }
 0xdd3   :  { %748 = vmatmul.msk.bf16.vlgmr.msrb.gmra.mxu3 %vm128_vm2, %v524_v28 }
 0xe56   :  { %v549_v30 = vpop.f32.mrf.mxu3 }
 0xe57   :  { %v553_v31 = vadd.f32 %v549_v30, %v516_v29 }
 0xe59   :  { %823 = vtanh.f32 %v553_v31  ;;  %v554_v34 = vmul.f32 0.5, %v553_v31 }
 0xe5b   :  { %825 = vtanh.f32 %v554_v34 }
 0xe5e   :  { %v551_v32 = vpop.f32.mrf.mxu3 }
 0xe5f   :  { %v824_v33 = vpop.eup %823 }
 0xe60   :  { %561 = vrot.lane.b32.xlu1 %v824_v33, %s938_s23 }
 0xe61   :  { %v826_v36 = vpop.eup %825 }
 0xe62   :  { %v556_v37 = vadd.f32 1.0, %v826_v36 }
 0xe64   :  { %v557_v38 = vmul.f32 0.5, %v556_v37 }
 0xe66   :  { %v559_v42 = vmul.f32 %v557_v38, %v502_v19 }
 0xed2   :  { %v562_v39 = vpop.permute.xlu1 %561 }
 0xed3   :  { %v564_v40 = vmul.f32 %v562_v39, %v557_v38 }
 0xed5   :  { %566 = vrot.lane.b32.xlu2 %v564_v40, %s945_s7 }
 0xf2f   :  { %v567_v43 = vpop.permute.xlu2 %566 }
 0xf30   :  { %v569_v44 = vadd.f32 %v567_v43, %v559_v42 }
 0xf32   :  { %827 = vtanh.f32 %v569_v44 }
 0xf38   :  { %v828_v45 = vpop.eup %827 }
 0xf39   :  { %572 = vrot.lane.b32.xlu0 %v828_v45, %s938_s23 }
 0xfab   :  { %v573_v48 = vpop.permute.xlu0 %572 }
 0xfac   :  { %v575_v49 = vmul.f32 %v573_v48, %v557_v38 }
 0xfae   :  { %v576_v50 = vpack.c.bf16 %v575_v49, %v575_v49 }
 0xfb0   :  { %v588_v51 = vunpack.c.l.b16 %v576_v50  ;;  %v578_v61 = vrot.slane %v576_v50, 6 }
 0xfb2   :  { %v589_v52 = vpack.c.b16 %v588_v51, %v588_v51 }
 0xfb4   :  { %590 = vrot.lane.b32.xlu1 %v589_v52, %s945_s7 }
0x1026   :  { %v591_v53 = vpop.permute.xlu1 %590 }
0x1027   :  { %757 = vmatmul.msk.bf16.vlgmr.msra.gmra.mxu0 %vm128_vm2, %v591_v53 }
0x10a4   :  { %v616_v55 = vpop.f32.mrf.mxu0 }
0x10a5   :  { %v620_v56 = vadd.f32 %v616_v55, %v583_v54 }
0x10a7   :  { %829 = vtanh.f32 %v620_v56  ;;  %v621_v62 = vmul.f32 0.5, %v620_v56 }
0x10a9   :  { %831 = vtanh.f32 %v621_v62 }
0x10ac   :  { %v618_v57 = vpop.f32.mrf.mxu0 }
0x10ad   :  { %v830_v59 = vpop.eup %829 }
0x10ae   :  { %628 = vrot.lane.b32.xlu2 %v830_v59, %s938_s23 }
0x10af   :  { %v832_v63 = vpop.eup %831 }
0x10b0   :  { %v623_v0 = vadd.f32 1.0, %v832_v63 }
0x10b2   :  { %v624_v2 = vmul.f32 0.5, %v623_v0 }
0x10b4   :  { %v626_v7 = vmul.f32 %v624_v2, %v569_v44 }
0x10b6   :  { %174 = vrot.lane.b32.xlu2 %v998_v35, %s945_s7  ;;  %v241_v35 = vrot.slane %v1006_v58, 7 }
0x10be   :  { %378 = vrot.lane.b32.xlu2 %v377_v60, %s945_s7 }
0x10c6   :  { %579 = vrot.lane.b32.xlu2 %v578_v61, %s945_s7 }
0x1108   :  { %v629_v3 = vpop.permute.xlu2 %628 }
0x1109   :  { %v631_v4 = vmul.f32 %v629_v3, %v624_v2 }
0x110b   :  { %633 = vrot.lane.b32.xlu0 %v631_v4, %s945_s7 }
0x1110   :  { %v175_v5 = vpop.permute.xlu2 %174 }
0x1111   :  { %178 = vst.msk [vmem:[#allocation11] sm:$0x1] %vm177_vm3, %v175_v5 }
0x1113   :  { %242 = vrot.lane.b32.xlu0 %v241_v35, %s945_s7 }
0x1118   :  { %v379_v41 = vpop.permute.xlu2 %378 }
0x1119   :  { %382 = vst.msk [vmem:[#allocation11] sm:$0x8] %vm381_vm4, %v379_v41 }
0x111b   :  { %445 = vrot.lane.b32.xlu0 %v1030_v1, %s945_s7 }
0x1120   :  { %v580_v6 = vpop.permute.xlu2 %579 }
0x1121   :  { %582 = vst.msk [vmem:[#allocation11 + $0x4] sm:$0x4] %vm313_vm5, %v580_v6 }
0x117d   :  { %v634_v8 = vpop.permute.xlu0 %633 }
0x117e   :  { %v636_v9 = vadd.f32 %v634_v8, %v626_v7 }
0x1180   :  { %833 = vtanh.f32 %v636_v9  ;;  %657 = vrot.lane.b32.xlu2 %v636_v9, %s946_s2 }
0x1185   :  { %v243_v58 = vpop.permute.xlu0 %242 }
0x1186   :  { %v834_v10 = vpop.eup %833  ;;  %246 = vst.msk [vmem:[#allocation11] sm:$0x2] %vm245_vm6, %v243_v58 }
0x1187   :  { %639 = vrot.lane.b32.xlu1 %v834_v10, %s938_s23 }
0x118d   :  { %v446_v1 = vpop.permute.xlu0 %445 }
0x118e   :  { %448 = vst.msk [vmem:[#allocation11 + $0x4] sm:$0x1] %vm177_vm3, %v446_v1 }
0x118f   :  { %310 = vrot.lane.b32.xlu1 %v309_v11, %s945_s7 }
0x1197   :  { %512 = vrot.lane.b32.xlu1 %v511_v12, %s945_s7 }
0x11da   :  { %v658_v13 = vpop.permute.xlu2 %657 }
0x11db   :  { %660 = vst.msk [vmem:[#allocation3] sm:$0x3] %vm70_vm0, %v658_v13 }
0x11f9   :  { %v640_v14 = vpop.permute.xlu1 %639 }
0x11fa   :  { %v642_v15 = vmul.f32 %v640_v14, %v624_v2 }
0x11fc   :  { %v643_v16 = vpack.c.bf16 %v642_v15, %v642_v15  ;;  %651 = vrot.lane.b32.xlu1 %v642_v15, %s945_s7 }
0x11fe   :  { %v645_v18 = vrot.slane %v643_v16, 5 }
0x1200   :  { %646 = vrot.lane.b32.xlu0 %v645_v18, %s945_s7 }
0x1201   :  { %v311_v17 = vpop.permute.xlu1 %310 }
0x1202   :  { %314 = vst.msk [vmem:[#allocation11] sm:$0x4] %vm313_vm5, %v311_v17 }
0x1209   :  { %v513_v19 = vpop.permute.xlu1 %512 }
0x120a   :  { %515 = vst.msk [vmem:[#allocation11 + $0x4] sm:$0x2] %vm245_vm6, %v513_v19 }
0x126e   :  { %v652_v20 = vpop.permute.xlu1 %651 }
0x126f   :  { %655 = vst.msk [vmem:[#allocation2] sm:$0x3] %vm70_vm0, %v652_v20 }
0x1272   :  { %v647_v21 = vpop.permute.xlu0 %646 }
0x1273   :  { %649 = vst.msk [vmem:[#allocation11 + $0x4] sm:$0x8] %vm381_vm4, %v647_v21 }
0x1274   :  { %673 = dma.vmem_to_hbm [thread:$0]  %s666_s9, 128, %s668_s12, [#allocation7], %s938_s23, %s938_s23, %s939_s24  }
0x1275   :  { %935 = dma.done.wait [#allocation7], 128  }
0x1276   :  { %936 = vsyncadd [#allocation7], 4294967168 }
0x1277   :  { %678 = vsyncpa [#allocation6], 1 }
0x1278   :  { %679 = vsyncpa [#allocation9], 1 }
0x1279   :  { %680 = vsyncpa [#allocation7], 1 }

</bundles_post_ra>
